<compile_context>
chip_gen: v6e
topology: v6e:2x2x1
jax: 0.10.0
libtpu: 0.0.40
codegen_flags: <defaults>
</compile_context>

<pallas_src>
import math

import jax
import jax.numpy as jnp
from jax.experimental import pallas as pl
from jax.experimental.pallas import tpu as pltpu


def linear_wn_gelu_kernel(x_ref, v_ref, scale_ref, b_ref, o_ref, acc_ref):
    k = pl.program_id(2)

    @pl.when(k == 0)
    def _():
        acc_ref[...] = jnp.zeros_like(acc_ref)

    # x block: (tm, tk), v block: (tn, tk); contract over in_f (axis 1 of both).
    acc_ref[...] += jax.lax.dot_general(
        x_ref[...],
        v_ref[...],
        dimension_numbers=(((1,), (1,)), ((), ())),
        preferred_element_type=jnp.float32,
    )

    @pl.when(k == pl.num_programs(2) - 1)
    def _():
        # Fold weight-norm scale + bias into the epilogue (once per output tile).
        y = acc_ref[...] * scale_ref[...] + b_ref[...]
        o_ref[...] = (
            0.5 * y * (1.0 + jnp.tanh(y * 0.7978845608 * (1.0 + 0.044715 * y * y)))
        ).astype(o_ref.dtype)


def _round_up(a, m):
    return ((a + m - 1) // m) * m


def linear_wn_gelu(x, v, g, b, *, tm=256, tn=256, tk=512):
    """x: (B, in_f) f32; v: (out_f, in_f) f32; g: (out_f,) f32; b: (out_f,) f32."""
    B, in_f = x.shape
    out_f, in_f2 = v.shape
    assert in_f == in_f2

    # Weight-norm column scale, computed once per call (weights only).
    # Note: like PyTorch weight_norm, an exactly-zero weight row yields inf/NaN.
    scale = g * jax.lax.rsqrt(jnp.sum(v * v, axis=1))  # (out_f,)

    # Clamp tiles to the (padded) problem size; keep them (8,128)-aligned.
    tm = min(tm, _round_up(B, 8))
    tn = min(tn, _round_up(out_f, 128))
    tk = min(tk, _round_up(in_f, 128))

    B_p = _round_up(B, tm)
    out_p = _round_up(out_f, tn)
    in_p = _round_up(in_f, tk)

    # Zero-padding is exact: padded K contributes 0 to the dot, padded batch
    # rows / out columns are sliced off below.
    x_p = jnp.pad(x, ((0, B_p - B), (0, in_p - in_f)))
    v_p = jnp.pad(v, ((0, out_p - out_f), (0, in_p - in_f)))
    scale_p = jnp.pad(scale, (0, out_p - out_f)).reshape(1, out_p)
    b_p = jnp.pad(b, (0, out_p - out_f)).reshape(1, out_p)

    grid = (B_p // tm, out_p // tn, in_p // tk)

    out = pl.pallas_call(
        linear_wn_gelu_kernel,
        out_shape=jax.ShapeDtypeStruct((B_p, out_p), x.dtype),
        grid_spec=pltpu.PrefetchScalarGridSpec(
            num_scalar_prefetch=0,
            grid=grid,
            in_specs=[
                pl.BlockSpec((tm, tk), lambda i, j, k: (i, k)),   # x
                pl.BlockSpec((tn, tk), lambda i, j, k: (j, k)),   # v (out, in)
                pl.BlockSpec((1, tn), lambda i, j, k: (0, j)),    # scale
                pl.BlockSpec((1, tn), lambda i, j, k: (0, j)),    # bias
            ],
            out_specs=pl.BlockSpec((tm, tn), lambda i, j, k: (i, j)),
            scratch_shapes=[pltpu.VMEM((tm, tn), jnp.float32)],
        ),
        compiler_params=pltpu.CompilerParams(
            dimension_semantics=("parallel", "parallel", "arbitrary"),
        ),
    )(x_p, v_p, scale_p, b_p)

    return out[:B, :out_f]


def _reference(x, v, g, b):
    w_eff = (g / jnp.linalg.norm(v, axis=1))[:, None] * v
    y = x @ w_eff.T + b
    return 0.5 * y * (1.0 + jnp.tanh(y * 0.7978845608 * (1.0 + 0.044715 * y * y)))


def _make_params(key, in_features, out_features, activations=True):
    # Mirrors reset_parameters(): v ~ N(0, sqrt(2/in)); g = ||v_row||; b = 0,
    # so the effective initial weight equals v (weight_norm's init property).
    std = math.sqrt((2.0 if activations else 1.0) / in_features)
    v = std * jax.random.normal(key, (out_features, in_features), dtype=jnp.float32)
    g = jnp.sqrt(jnp.sum(v * v, axis=1))
    b = jnp.zeros((out_features,), dtype=jnp.float32)
    return v, g, b


if __name__ == "__main__":
    key = jax.random.PRNGKey(0)

    # Case 1: small, module-consistent shapes (single tile after padding).
    batch, in_features, out_features = 8, 32, 64
    kx, kv, key = jax.random.split(key, 3)
    x = jax.random.normal(kx, (batch, in_features), dtype=jnp.float32)
    v, g, b = _make_params(kv, in_features, out_features)

    out = jax.block_until_ready(linear_wn_gelu(x, v, g, b))
    ref = _reference(x, v, g, b)
    assert out.shape == ref.shape
    assert jnp.allclose(out, ref, atol=1e-5, rtol=1e-5), "mismatch vs reference (case 1)"

    # Case 2: forces a multi-step K reduction and multiple grid tiles to
    # exercise the accumulator init/finalize path.
    batch2, in2, out2 = 16, 384, 256
    kx2, kv2 = jax.random.split(key)
    x2 = jax.random.normal(kx2, (batch2, in2), dtype=jnp.float32)
    v2, g2, b2 = _make_params(kv2, in2, out2)

    out2_v = jax.block_until_ready(
        linear_wn_gelu(x2, v2, g2, b2, tm=8, tn=128, tk=128)
    )
    ref2 = _reference(x2, v2, g2, b2)
    assert jnp.allclose(out2_v, ref2, atol=1e-4, rtol=1e-4), "mismatch vs reference (case 2)"

    print("KERNEL_OK")
</pallas_src>

<mosaic_0001>
module attributes {stable_mosaic.version = 11 : i64} {
  func.func @linear_wn_gelu_kernel(%arg0: i32, %arg1: i32, %arg2: i32, %arg3: memref<8x128xf32, #tpu.memory_space<vmem>>, %arg4: memref<128x128xf32, #tpu.memory_space<vmem>>, %arg5: memref<1x128xf32, #tpu.memory_space<vmem>>, %arg6: memref<1x128xf32, #tpu.memory_space<vmem>>, %arg7: memref<8x128xf32, #tpu.memory_space<vmem>>, %arg8: memref<8x128xf32, #tpu.memory_space<vmem>>) attributes {dimension_semantics = [#tpu.dimension_semantics<parallel>, #tpu.dimension_semantics<parallel>, #tpu.dimension_semantics<arbitrary>], iteration_bounds = array<i64: 1, 1, 1>, scalar_prefetch = 0 : i64, scratch_operands = 1 : i64, tpu.core_type = #tpu.core_type<tc>, window_params = [{transform_indices = @transform_0, window_bounds = array<i64: 8, 128>}, {transform_indices = @transform_1, window_bounds = array<i64: 128, 128>}, {transform_indices = @transform_2, window_bounds = array<i64: 1, 128>}, {transform_indices = @transform_3, window_bounds = array<i64: 1, 128>}, {transform_indices = @transform_4, window_bounds = array<i64: 8, 128>}]} {
    %c0_i32 = arith.constant 0 : i32
    %0 = arith.cmpi eq, %arg2, %c0_i32 : i32
    %1 = arith.extui %0 : i1 to i32
    %c0_i32_0 = arith.constant 0 : i32
    %2 = arith.cmpi ne, %1, %c0_i32_0 : i32
    scf.if %2 {
      %cst_10 = arith.constant 0.000000e+00 : f32
      %12 = vector.broadcast %cst_10 : f32 to vector<8x128xf32>
      %c0_11 = arith.constant 0 : index
      %c0_12 = arith.constant 0 : index
      %13 = vector.load %arg8[%c0_11, %c0_12] : memref<8x128xf32, #tpu.memory_space<vmem>>, vector<8x128xf32>
      tpu.vector_store %arg8[%c0_11, %c0_12], %12 {strides = array<i32>} : memref<8x128xf32, #tpu.memory_space<vmem>>, vector<8x128xf32>,
    } else {
    }
    %c0 = arith.constant 0 : index
    %c0_1 = arith.constant 0 : index
    %3 = vector.load %arg8[%c0, %c0_1] : memref<8x128xf32, #tpu.memory_space<vmem>>, vector<8x128xf32>
    %c0_2 = arith.constant 0 : index
    %c0_3 = arith.constant 0 : index
    %4 = vector.load %arg3[%c0_2, %c0_3] : memref<8x128xf32, #tpu.memory_space<vmem>>, vector<8x128xf32>
    %c0_4 = arith.constant 0 : index
    %c0_5 = arith.constant 0 : index
    %5 = vector.load %arg4[%c0_4, %c0_5] : memref<128x128xf32, #tpu.memory_space<vmem>>, vector<128x128xf32>
    %cst = arith.constant dense<0.000000e+00> : vector<8x128xf32>
    %6 = tpu.matmul %4, %5, %cst {dimension_numbers = #tpu.dot_dimension_numbers<[1], [1], [0], [0], [0, 0, 1, 0], [], []>} : vector<8x128xf32>, vector<128x128xf32>, vector<8x128xf32> -> vector<8x128xf32>
    %7 = arith.addf %3, %6 : vector<8x128xf32>
    %c0_6 = arith.constant 0 : index
    %c0_7 = arith.constant 0 : index
    %8 = vector.load %arg8[%c0_6, %c0_7] : memref<8x128xf32, #tpu.memory_space<vmem>>, vector<8x128xf32>
    tpu.vector_store %arg8[%c0_6, %c0_7], %7 {strides = array<i32>} : memref<8x128xf32, #tpu.memory_space<vmem>>, vector<8x128xf32>,
    %c0_i32_8 = arith.constant 0 : i32
    %9 = arith.cmpi eq, %arg2, %c0_i32_8 : i32
    %10 = arith.extui %9 : i1 to i32
    %c0_i32_9 = arith.constant 0 : i32
    %11 = arith.cmpi ne, %10, %c0_i32_9 : i32
    scf.if %11 {
      %c0_10 = arith.constant 0 : index
      %c0_11 = arith.constant 0 : index
      %12 = vector.load %arg8[%c0_10, %c0_11] : memref<8x128xf32, #tpu.memory_space<vmem>>, vector<8x128xf32>
      %c0_12 = arith.constant 0 : index
      %c0_13 = arith.constant 0 : index
      %13 = vector.load %arg5[%c0_12, %c0_13] : memref<1x128xf32, #tpu.memory_space<vmem>>, vector<1x128xf32>
      %14 = vector.broadcast %13 : vector<1x128xf32> to vector<8x128xf32>
      %15 = arith.mulf %12, %14 : vector<8x128xf32>
      %c0_14 = arith.constant 0 : index
      %c0_15 = arith.constant 0 : index
      %16 = vector.load %arg6[%c0_14, %c0_15] : memref<1x128xf32, #tpu.memory_space<vmem>>, vector<1x128xf32>
      %17 = vector.broadcast %16 : vector<1x128xf32> to vector<8x128xf32>
      %18 = arith.addf %15, %17 : vector<8x128xf32>
      %cst_16 = arith.constant 5.000000e-01 : f32
      %19 = vector.broadcast %cst_16 : f32 to vector<8x128xf32>
      %20 = arith.mulf %19, %18 : vector<8x128xf32>
      %cst_17 = arith.constant 0.797884583 : f32
      %21 = vector.broadcast %cst_17 : f32 to vector<8x128xf32>
      %22 = arith.mulf %18, %21 : vector<8x128xf32>
      %cst_18 = arith.constant 4.471500e-02 : f32
      %23 = vector.broadcast %cst_18 : f32 to vector<8x128xf32>
      %24 = arith.mulf %23, %18 : vector<8x128xf32>
      %25 = arith.mulf %24, %18 : vector<8x128xf32>
      %cst_19 = arith.constant 1.000000e+00 : f32
      %26 = vector.broadcast %cst_19 : f32 to vector<8x128xf32>
      %27 = arith.addf %26, %25 : vector<8x128xf32>
      %28 = arith.mulf %22, %27 : vector<8x128xf32>
      %29 = math.tanh %28 : vector<8x128xf32>
      %cst_20 = arith.constant 1.000000e+00 : f32
      %30 = vector.broadcast %cst_20 : f32 to vector<8x128xf32>
      %31 = arith.addf %30, %29 : vector<8x128xf32>
      %32 = arith.mulf %20, %31 : vector<8x128xf32>
      %c0_21 = arith.constant 0 : index
      %c0_22 = arith.constant 0 : index
      %33 = vector.load %arg7[%c0_21, %c0_22] : memref<8x128xf32, #tpu.memory_space<vmem>>, vector<8x128xf32>
      tpu.vector_store %arg7[%c0_21, %c0_22], %32 {strides = array<i32>} : memref<8x128xf32, #tpu.memory_space<vmem>>, vector<8x128xf32>,
    } else {
    }
    return
  }
  func.func @transform_0(%arg0: i32, %arg1: i32, %arg2: i32) -> (i32, i32) {
    %c0_i32 = arith.constant 0 : i32
    return %arg0, %arg2 : i32, i32
  }
  func.func @transform_1(%arg0: i32, %arg1: i32, %arg2: i32) -> (i32, i32) {
    %c0_i32 = arith.constant 0 : i32
    return %arg1, %arg2 : i32, i32
  }
  func.func @transform_2(%arg0: i32, %arg1: i32, %arg2: i32) -> (i32, i32) {
    %c0_i32 = arith.constant 0 : i32
    %c0_i32_0 = arith.constant 0 : i32
    return %c0_i32, %arg1 : i32, i32
  }
  func.func @transform_3(%arg0: i32, %arg1: i32, %arg2: i32) -> (i32, i32) {
    %c0_i32 = arith.constant 0 : i32
    %c0_i32_0 = arith.constant 0 : i32
    return %c0_i32, %arg1 : i32, i32
  }
  func.func @transform_4(%arg0: i32, %arg1: i32, %arg2: i32) -> (i32, i32) {
    %c0_i32 = arith.constant 0 : i32
    return %arg0, %arg1 : i32, i32
  }
}

</mosaic_0001>

<bundles_post_ra>
// kernel: tpu_custom_call.1
= control target key start
LH: loop header
LB: loop body
LE: loop exit
PB: predicated region body
PF: predicated region fallthrough
CT: control target
= control target key end

     0   :  { %9 = vsyncpa [#allocation4], 0  ;;  %s361_s0 = inlined_call_operand.hbm [shape: f32[8,128], index: 0, kind: input, shape index: {}]   ;;  %s362_s1 = inlined_call_operand.hbm [shape: f32[128,128], index: 1, kind: input, shape index: {}]   ;;  %s363_s2 = inlined_call_operand.vmem [shape: f32[1,128], index: 2, kind: input, shape index: {}]   ;;  %s364_s3 = inlined_call_operand.vmem [shape: f32[1,128], index: 3, kind: input, shape index: {}]   ;;  %s365_s4 = inlined_call_operand.hbm [shape: f32[8,128], index: 4, kind: output, shape index: {}]  }
   0x1   :  { %10 = vsyncpa [#allocation7], 0 }
   0x2   :  { %11 = vsyncpa [#allocation5], 0  ;;  %s314_s15 = smov [#allocation3]   ;;  %s315_s17 = smov [#allocation6]  }
   0x3   :  { %s18_s16 = sshll.u32 %s314_s15, 4  ;;  %s27_s18 = sshll.u32 %s315_s17, 4  ;;  %s19_s16 = int_to_ptr.vmem [resolvable:$true] %s18_s16  ;;  %s28_s18 = int_to_ptr.vmem [resolvable:$true] %s27_s18 }
   0x4   :  { %s256_s19 = scalar_lea.vmem %s19_s16, 128  ;;  %p261_p1 = scmp.lt.s32.totalorder %s19_s16, %s19_s16 }
   0x5   :  { %p257_p0 = scmp.ne.s32.totalorder %s19_s16, %s256_s19  ;;  %p262_p2 = scmp.lt.s32.totalorder %s256_s19, %s256_s19 }
   0x7   :  { %p263_p3 = por %p262_p2, %p261_p1 }
   0x9   :  { %p264_p4 = pnand %p263_p3, %p257_p0 }
   0xb   :  { %267 = shalt.err (!%p264_p4)
}
   0xc   :  { %21 = dma.hbm_to_vmem [thread:$0]  %s361_s0, 128, %s19_s16, [#allocation4]  }
   0xd   :  { %s276_s22 = scalar_lea.vmem %s28_s18, 2048  ;;  %p281_p6 = scmp.lt.s32.totalorder %s28_s18, %s28_s18 }
   0xe   :  { %p277_p5 = scmp.ne.s32.totalorder %s28_s18, %s276_s22  ;;  %p282_p7 = scmp.lt.s32.totalorder %s276_s22, %s276_s22 }
  0x10   :  { %p283_p8 = por %p282_p7, %p281_p6 }
  0x12   :  { %p284_p9 = pnand %p283_p8, %p277_p5 }
  0x14   :  { %287 = shalt.err (!%p284_p9)
}
  0x15   :  { %s316_s23 = smov 128   ;;  %s317_s24 = smov 8  }
  0x16   :  { %33 = dma.hbm_to_vmem [thread:$0]  %s362_s1, 2048, %s28_s18, [#allocation7], %s316_s23, %s316_s23, %s317_s24  }
  0x17   :  { %308 = dma.done.wait [#allocation4], 128  }
  0x18   :  { %309 = vsyncadd [#allocation4], 4294967168 }
  0x19   :  { %310 = dma.done.wait [#allocation7], 2048  }
  0x1a   :  { %311 = vsyncadd [#allocation7], 4294965248  ;;  %v318_v0 = vmov 0.0   ;;  %vm319_vm0 = vmmov 0   ;;  %v66_v1 = vld [vmem:[#allocation6 + $0x78] sm:$0xff]  ;;  %v65_v2 = vld [vmem:[#allocation6 + $0x70] sm:$0xff] }
  0x1b   :  { %204 = vmatprep.subr.mxu0 %v318_v0  ;;  %236 = vmatprep.mubr.msk.f32.mxu0 %vm319_vm0, %v318_v0  ;;  %v64_v3 = vld [vmem:[#allocation6 + $0x68] sm:$0xff]  ;;  %v63_v4 = vld [vmem:[#allocation6 + $0x60] sm:$0xff]  ;;  %v62_v5 = vld [vmem:[#allocation6 + $0x58] sm:$0xff]  ;;  %s320_s29 = smov [#allocation8]  }
  0x1c   :  { %205 = vmatpush3.xpose.msra.mxu0 %v66_v1  ;;  %v61_v6 = vld [vmem:[#allocation6 + $0x50] sm:$0xff]  ;;  %v60_v7 = vld [vmem:[#allocation6 + $0x48] sm:$0xff]  ;;  %v59_v8 = vld [vmem:[#allocation6 + $0x40] sm:$0xff]  ;;  %s175_s30 = sshll.u32 %s320_s29, 4  ;;  %s176_s30 = int_to_ptr.vmem [resolvable:$true] %s175_s30 }
  0x1d   :  { %206 = vmatprep.subr.mxu0 %v318_v0  ;;  %v58_v9 = vld [vmem:[#allocation6 + $0x38] sm:$0xff]  ;;  %v57_v10 = vld [vmem:[#allocation6 + $0x30] sm:$0xff]  ;;  %v56_v11 = vld [vmem:[#allocation6 + $0x28] sm:$0xff]  ;;  %p293_p11 = scmp.lt.s32.totalorder %s176_s30, %s176_s30 }
  0x1e   :  { %v55_v12 = vld [vmem:[#allocation6 + $0x20] sm:$0xff]  ;;  %v54_v13 = vld [vmem:[#allocation6 + $0x18] sm:$0xff]  ;;  %v53_v14 = vld [vmem:[#allocation6 + $0x10] sm:$0xff] }
  0x1f   :  { %v52_v15 = vld [vmem:[#allocation6 + $0x8] sm:$0xff]  ;;  %v51_v16 = vld [vmem:[#allocation6] sm:$0xff]  ;;  %v50_v17 = vld [vmem:[#allocation3] sm:$0xff] }
  0x20   :  { %207 = vmatpush3.xpose.msra.mxu0 %v65_v2  ;;  %v185_v18 = vld [vmem:[%s363_s2] ss:$0 sm:$0xff]  ;;  %s288_s2 = scalar_lea.vmem %s176_s30, 128 }
  0x21   :  { %208 = vmatprep.subr.mxu0 %v318_v0  ;;  %v186_v20 = vld [vmem:[%s364_s3] ss:$0 sm:$0xff]  ;;  %p289_p10 = scmp.ne.s32.totalorder %s176_s30, %s288_s2  ;;  %p294_p12 = scmp.lt.s32.totalorder %s288_s2, %s288_s2 }
  0x23   :  { %p295_p13 = por %p294_p12, %p293_p11 }
  0x24   :  { %209 = vmatpush3.xpose.msra.mxu0 %v64_v3 }
  0x25   :  { %210 = vmatprep.subr.mxu0 %v318_v0  ;;  %p296_p0 = pnand %p295_p13, %p289_p10 }
  0x28   :  { %211 = vmatpush3.xpose.msra.mxu0 %v63_v4 }
  0x29   :  { %212 = vmatprep.subr.mxu0 %v318_v0 }
  0x2c   :  { %213 = vmatpush3.xpose.msra.mxu0 %v62_v5 }
  0x2d   :  { %214 = vmatprep.subr.mxu0 %v318_v0 }
  0x30   :  { %215 = vmatpush3.xpose.msra.mxu0 %v61_v6 }
  0x31   :  { %216 = vmatprep.subr.mxu0 %v318_v0 }
  0x34   :  { %217 = vmatpush3.xpose.msra.mxu0 %v60_v7 }
  0x35   :  { %218 = vmatprep.subr.mxu0 %v318_v0 }
  0x38   :  { %219 = vmatpush3.xpose.msra.mxu0 %v59_v8 }
  0x39   :  { %220 = vmatprep.subr.mxu0 %v318_v0 }
  0x3c   :  { %221 = vmatpush3.xpose.msra.mxu0 %v58_v9 }
  0x3d   :  { %222 = vmatprep.subr.mxu0 %v318_v0 }
  0x40   :  { %223 = vmatpush3.xpose.msra.mxu0 %v57_v10 }
  0x41   :  { %224 = vmatprep.subr.mxu0 %v318_v0 }
  0x44   :  { %225 = vmatpush3.xpose.msra.mxu0 %v56_v11 }
  0x45   :  { %226 = vmatprep.subr.mxu0 %v318_v0 }
  0x48   :  { %227 = vmatpush3.xpose.msra.mxu0 %v55_v12 }
  0x49   :  { %228 = vmatprep.subr.mxu0 %v318_v0 }
  0x4c   :  { %229 = vmatpush3.xpose.msra.mxu0 %v54_v13 }
  0x4d   :  { %230 = vmatprep.subr.mxu0 %v318_v0 }
  0x50   :  { %231 = vmatpush3.xpose.msra.mxu0 %v53_v14 }
  0x51   :  { %232 = vmatprep.subr.mxu0 %v318_v0 }
  0x54   :  { %233 = vmatpush3.xpose.msra.mxu0 %v52_v15 }
  0x55   :  { %234 = vmatprep.subr.mxu0 %v318_v0 }
  0x58   :  { %235 = vmatpush3.xpose.msra.mxu0 %v51_v16 }
  0x5b   :  { %237 = vmatmul.mubr.f32.vlgmr.msra.gmra.mxu0 %v50_v17 }
 0x11b   :  { %v133_v19 = vpop.f32.mrf.mxu0 }
 0x11c   :  { %v150_v21 = vmul.f32 %v185_v18, %v133_v19 }
 0x11d   :  { %v238_v22 = vpop.f32.mrf.mxu0 }
 0x11e   :  { %v158_v23 = vadd.f32 %v186_v20, %v150_v21 }
 0x120   :  { %v161_v24 = vmul.f32 0.044715, %v158_v23  ;;  %v160_v26 = vmul.f32 0.7978846, %v158_v23  ;;  %v159_v30 = vmul.f32 0.5, %v158_v23 }
 0x122   :  { %v162_v25 = vmul.f32 %v161_v24, %v158_v23 }
 0x124   :  { %v163_v27 = vadd.f32 1.0, %v162_v25 }
 0x126   :  { %v164_v28 = vmul.f32 %v163_v27, %v160_v26 }
 0x128   :  { %246 = vtanh.f32 %v164_v28 }
 0x135   :  { %v247_v29 = vpop.eup %246 }
 0x136   :  { %v166_v31 = vadd.f32 1.0, %v247_v29 }
 0x138   :  { %v167_v32 = vmul.f32 %v166_v31, %v159_v30 }
 0x13a   :  { %168 = vst [vmem:[#allocation8] sm:$0xff] %v167_v32 }
 0x13b   :  { %299 = shalt.err (!%p296_p0)
}
 0x13c   :  { %178 = dma.vmem_to_hbm [thread:$0]  %s176_s30, 128, %s365_s4, [#allocation5]  }
 0x13d   :  { %312 = dma.done.wait [#allocation5], 128  }
 0x13e   :  { %313 = vsyncadd [#allocation5], 4294967168 }
 0x13f   :  { %182 = vsyncpa [#allocation4], 1 }
 0x140   :  { %183 = vsyncpa [#allocation7], 1 }
 0x141   :  { %184 = vsyncpa [#allocation5], 1 }

</bundles_post_ra>
